<compile_context>
chip_gen: v7x
topology: tpu7x:2x2x1
jax: 0.10.0
libtpu: 0.0.40
codegen_flags: <defaults>
</compile_context>

<pallas_src>
import functools

import jax
import jax.numpy as jnp
import numpy as np
from jax.experimental import pallas as pl
from jax.experimental.pallas import tpu as pltpu

_LANE = 128
_SUBLANE = 8
_LN_EPS = 1e-5  # torch.nn.LayerNorm default


def _round_up(x, m):
    return ((x + m - 1) // m) * m


def _bilinear_fusion_kernel(seq_ref, img_ref, t_ref, e_ref, w_ref,
                            gamma_ref, beta_ref, out_ref, *, out_dim):
    """One batch tile: MXU-assisted Khatri-Rao -> matmul -> LN -> affine -> ReLU."""
    seq = seq_ref[...].astype(jnp.bfloat16)    # (TB, S)
    img = img_ref[...].astype(jnp.bfloat16)    # (TB, I)

    # MXU-assisted row-wise Khatri-Rao expansion. T[i, j*S+i] = 1 and
    # E[j, j*S+i] = 1 have exactly one nonzero per column, so these matmuls are
    # exact copies/broadcasts done on the MXU instead of the store slot / XLU.
    seq_exp = jnp.dot(seq, t_ref[...], preferred_element_type=jnp.float32)  # (TB, K)
    img_exp = jnp.dot(img, e_ref[...], preferred_element_type=jnp.float32)  # (TB, K)
    # One full-width, lane-dense VPU multiply; feed the value straight into dot.
    a = (seq_exp * img_exp).astype(jnp.bfloat16)                            # (TB, K)

    # Single MXU matmul, K = I*S, N = O_pad (lane-dense), bf16 in / f32 acc.
    acc = jnp.dot(a, w_ref[...], preferred_element_type=jnp.float32)        # (TB, O_pad)

    # Dropout == nn.Identity (bili_dropout=None): no-op.

    # LayerNorm over the TRUE output_dim, single pass: var = E[x^2] - mean^2.
    # Padded lanes of `acc` are exactly 0 (W zero-padded in the wrapper), so
    # both sums over the padded axis equal the sums over out_dim — no mask.
    inv_o = jnp.float32(1.0 / out_dim)
    s1 = jnp.sum(acc, axis=-1, keepdims=True)
    s2 = jnp.sum(acc * acc, axis=-1, keepdims=True)
    mean = s1 * inv_o
    var = jnp.maximum(s2 * inv_o - mean * mean, 0.0)
    y = (acc - mean) * jax.lax.rsqrt(var + _LN_EPS)

    # Affine (bili_affine=True) + ReLU. gamma/beta are zero in padded lanes, so
    # padded outputs are exactly 0 and are sliced off in the wrapper.
    y = y * gamma_ref[...] + beta_ref[...]
    out_ref[...] = jnp.maximum(y, 0.0).astype(out_ref.dtype)


def prepare_bilinear_fusion_params(w, gamma, beta):
    """One-time parameter prep (hoisted out of the per-call path).

    w:     (output_dim, seq_dim, img_dim)  -- torch nn.Bilinear weight layout
    gamma: (output_dim,) LayerNorm weight
    beta:  (output_dim,) LayerNorm bias
    """
    O, S, I = w.shape
    K = I * S
    O_pad = _round_up(O, _LANE)  # lane-dense output => unmasked vst

    # W_flat[j*S + i, o] = w[o, i, j]; zero-pad the output axis (LN invariant:
    # padded lanes of the matmul result must be exactly zero).
    w_flat = jnp.transpose(w, (2, 1, 0)).reshape(K, O).astype(jnp.bfloat16)
    w_flat = jnp.pad(w_flat, ((0, 0), (0, O_pad - O)))
    gamma_p = jnp.pad(gamma.reshape(1, O).astype(jnp.float32),
                      ((0, 0), (0, O_pad - O)))
    beta_p = jnp.pad(beta.reshape(1, O).astype(jnp.float32),
                     ((0, 0), (0, O_pad - O)))

    # Khatri-Rao selection matrices (0/1, bf16 => expansion matmuls are exact):
    #   T[i, k] = 1 iff k % S == i     (tiles seq across img_dim copies)
    #   E[j, k] = 1 iff k // S == j    (repeats each img element seq_dim times)
    k_idx = jnp.arange(K, dtype=jnp.int32)
    t_mat = (k_idx[None, :] % S == jnp.arange(S, dtype=jnp.int32)[:, None]
             ).astype(jnp.bfloat16)                                    # (S, K)
    e_mat = (k_idx[None, :] // S == jnp.arange(I, dtype=jnp.int32)[:, None]
             ).astype(jnp.bfloat16)                                    # (I, K)

    return dict(w_flat=w_flat, gamma=gamma_p, beta=beta_p,
                t_mat=t_mat, e_mat=e_mat,
                seq_dim=S, img_dim=I, out_dim=O, out_pad=O_pad)


def bilinear_fusion_apply(seq, img, params, *, block_b=1024,
                          vmem_budget=24 * 1024 * 1024):
    """BilinearFusion forward with pre-prepared params. Returns (B, output_dim) f32."""
    B, S = seq.shape
    Bi, I = img.shape
    assert S == params["seq_dim"] and I == params["img_dim"] and Bi == B
    O = params["out_dim"]
    O_pad = params["out_pad"]
    K = I * S

    # Batch tile: multiple of 8 sublanes; cap at ceil(B/2) so the grid has >=2
    # "parallel" steps whenever B allows it (both TensorCores on v7x).
    TB = min(block_b, _round_up(max(1, -(-B // 2)), _SUBLANE))

    # VMEM guard: the working set scales with K = S*I; shrink TB before the
    # per-step footprint approaches the scoped-VMEM limit (v7x has 64 MiB
    # physical / 32 MiB default scoped).
    def _vmem_estimate(tb):
        resident = K * O_pad * 2 + (S + I) * K * 2 + 2 * O_pad * 4
        io = 2 * (tb * S * 4 + tb * I * 4) + 2 * tb * O_pad * 4  # double-buffered
        working = tb * K * (4 + 4 + 2) + tb * O_pad * 4          # seq_exp/img_exp/a/acc
        return resident + io + working

    while TB > _SUBLANE and _vmem_estimate(TB) > vmem_budget:
        TB = max(_SUBLANE, _round_up(TB // 2, _SUBLANE))

    B_pad = _round_up(B, TB)
    if B_pad != B:
        seq = jnp.pad(seq, ((0, B_pad - B), (0, 0)))
        img = jnp.pad(img, ((0, B_pad - B), (0, 0)))
    grid = (B_pad // TB,)

    flops = (2 * B_pad * K * O_pad          # main matmul
             + 2 * B_pad * K * (S + I)      # expansion matmuls
             + 10 * B_pad * (K + O_pad))    # VPU build + LN epilogue
    bytes_accessed = (4 * B_pad * (S + I + O_pad)
                      + 2 * (K * O_pad + (S + I) * K) + 8 * O_pad)

    out = pl.pallas_call(
        functools.partial(_bilinear_fusion_kernel, out_dim=O),
        out_shape=jax.ShapeDtypeStruct((B_pad, O_pad), jnp.float32),
        grid_spec=pltpu.PrefetchScalarGridSpec(
            num_scalar_prefetch=0,
            grid=grid,
            in_specs=[
                pl.BlockSpec((TB, S), lambda b: (b, 0)),      # seq tile (pipelined)
                pl.BlockSpec((TB, I), lambda b: (b, 0)),      # img tile (pipelined)
                pl.BlockSpec((S, K), lambda b: (0, 0)),       # T, resident
                pl.BlockSpec((I, K), lambda b: (0, 0)),       # E, resident
                pl.BlockSpec((K, O_pad), lambda b: (0, 0)),   # W_flat, resident
                pl.BlockSpec((1, O_pad), lambda b: (0, 0)),   # gamma, resident
                pl.BlockSpec((1, O_pad), lambda b: (0, 0)),   # beta, resident
            ],
            out_specs=pl.BlockSpec((TB, O_pad), lambda b: (b, 0)),
        ),
        compiler_params=pltpu.CompilerParams(
            dimension_semantics=("parallel",),   # both TCs on v7x; harmless on v5e/v6e
            vmem_limit_bytes=32 * 1024 * 1024,
        ),
        cost_estimate=pl.CostEstimate(flops=flops, transcendentals=B_pad,
                                      bytes_accessed=bytes_accessed),
    )(seq, img, params["t_mat"], params["e_mat"],
      params["w_flat"], params["gamma"], params["beta"])

    return out[:B, :O]


def bilinear_fusion(seq, img, w, gamma, beta, *, block_b=1024):
    """Convenience wrapper: prepare params (normally done once at load) + apply."""
    params = prepare_bilinear_fusion_params(w, gamma, beta)
    return bilinear_fusion_apply(seq, img, params, block_b=block_b)


if __name__ == "__main__":
    # Small shapes consistent with the module's forward.
    B = 8
    seq_dim = 32
    img_dim = 16
    output_dim = 32

    key = jax.random.PRNGKey(0)
    k_seq, k_img, k_w, k_g, k_b = jax.random.split(key, 5)

    seq_features = jax.random.normal(k_seq, (B, seq_dim), jnp.float32)
    img_features = jax.random.normal(k_img, (B, img_dim), jnp.float32)

    # torch nn.Bilinear weight layout: (output_dim, seq_dim, img_dim).
    w = jax.random.normal(k_w, (output_dim, seq_dim, img_dim), jnp.float32) * 0.1
    # LayerNorm affine params (perturbed from identity so the affine path is exercised).
    gamma = (jnp.ones((output_dim,), jnp.float32)
             + 0.1 * jax.random.normal(k_g, (output_dim,), jnp.float32))
    beta = 0.1 * jax.random.normal(k_b, (output_dim,), jnp.float32)

    # Parameter prep is a one-time cost (hoisted out of the forward path).
    params = prepare_bilinear_fusion_params(w, gamma, beta)
    out = bilinear_fusion_apply(seq_features, img_features, params)
    out = jax.block_until_ready(out)

    # Pure-JAX reference: Bilinear -> Identity -> LayerNorm(affine) -> ReLU.
    fused = jnp.einsum("bi,oij,bj->bo", seq_features, w, img_features,
                       precision=jax.lax.Precision.HIGHEST)
    mean = jnp.mean(fused, axis=-1, keepdims=True)
    var = jnp.mean(jnp.square(fused - mean), axis=-1, keepdims=True)
    ref = (fused - mean) * jax.lax.rsqrt(var + 1e-5) * gamma[None, :] + beta[None, :]
    ref = jnp.maximum(ref, 0.0)

    # bf16 MXU operands (per perf review) => loosened tolerance vs the
    # HIGHEST-precision f32 reference; this is a precision choice, not a bug.
    np.testing.assert_allclose(np.asarray(out), np.asarray(ref),
                               rtol=3e-2, atol=3e-2)
    print("KERNEL_OK")
</pallas_src>

<mosaic_0001>
module attributes {stable_mosaic.version = 11 : i64} {
  func.func @_bilinear_fusion_kernel(%arg0: i32, %arg1: memref<8x32xf32, #tpu.memory_space<vmem>>, %arg2: memref<8x16xf32, #tpu.memory_space<vmem>>, %arg3: memref<32x512xbf16, #tpu.memory_space<vmem>>, %arg4: memref<16x512xbf16, #tpu.memory_space<vmem>>, %arg5: memref<512x128xbf16, #tpu.memory_space<vmem>>, %arg6: memref<1x128xf32, #tpu.memory_space<vmem>>, %arg7: memref<1x128xf32, #tpu.memory_space<vmem>>, %arg8: memref<8x128xf32, #tpu.memory_space<vmem>>) attributes {dimension_semantics = [#tpu.dimension_semantics<parallel>], iteration_bounds = array<i64: 1>, scalar_prefetch = 0 : i64, scratch_operands = 0 : i64, tpu.core_type = #tpu.core_type<tc>, window_params = [{transform_indices = @transform_0, window_bounds = array<i64: 8, 32>}, {transform_indices = @transform_1, window_bounds = array<i64: 8, 16>}, {pipeline_mode = #tpu.pipeline_mode<synchronous>, transform_indices = @transform_2, window_bounds = array<i64: 32, 512>}, {pipeline_mode = #tpu.pipeline_mode<synchronous>, transform_indices = @transform_3, window_bounds = array<i64: 16, 512>}, {pipeline_mode = #tpu.pipeline_mode<synchronous>, transform_indices = @transform_4, window_bounds = array<i64: 512, 128>}, {pipeline_mode = #tpu.pipeline_mode<synchronous>, transform_indices = @transform_5, window_bounds = array<i64: 1, 128>}, {pipeline_mode = #tpu.pipeline_mode<synchronous>, transform_indices = @transform_6, window_bounds = array<i64: 1, 128>}, {transform_indices = @transform_7, window_bounds = array<i64: 8, 128>}]} {
    %c0 = arith.constant 0 : index
    %c0_0 = arith.constant 0 : index
    %0 = vector.load %arg1[%c0, %c0_0] : memref<8x32xf32, #tpu.memory_space<vmem>>, vector<8x32xf32>
    %1 = arith.truncf %0 : vector<8x32xf32> to vector<8x32xbf16>
    %c0_1 = arith.constant 0 : index
    %c0_2 = arith.constant 0 : index
    %2 = vector.load %arg2[%c0_1, %c0_2] : memref<8x16xf32, #tpu.memory_space<vmem>>, vector<8x16xf32>
    %3 = arith.truncf %2 : vector<8x16xf32> to vector<8x16xbf16>
    %c0_3 = arith.constant 0 : index
    %c0_4 = arith.constant 0 : index
    %4 = vector.load %arg3[%c0_3, %c0_4] : memref<32x512xbf16, #tpu.memory_space<vmem>>, vector<32x512xbf16>
    %cst = arith.constant dense<0.000000e+00> : vector<8x512xf32>
    %5 = tpu.matmul %1, %4, %cst {dimension_numbers = #tpu.dot_dimension_numbers<[1], [0], [0], [1], [0, 0, 1, 1], [], []>} : vector<8x32xbf16>, vector<32x512xbf16>, vector<8x512xf32> -> vector<8x512xf32>
    %c0_5 = arith.constant 0 : index
    %c0_6 = arith.constant 0 : index
    %6 = vector.load %arg4[%c0_5, %c0_6] : memref<16x512xbf16, #tpu.memory_space<vmem>>, vector<16x512xbf16>
    %cst_7 = arith.constant dense<0.000000e+00> : vector<8x512xf32>
    %7 = tpu.matmul %3, %6, %cst_7 {dimension_numbers = #tpu.dot_dimension_numbers<[1], [0], [0], [1], [0, 0, 1, 1], [], []>} : vector<8x16xbf16>, vector<16x512xbf16>, vector<8x512xf32> -> vector<8x512xf32>
    %8 = arith.mulf %5, %7 : vector<8x512xf32>
    %9 = arith.truncf %8 : vector<8x512xf32> to vector<8x512xbf16>
    %c0_8 = arith.constant 0 : index
    %c0_9 = arith.constant 0 : index
    %10 = vector.load %arg5[%c0_8, %c0_9] : memref<512x128xbf16, #tpu.memory_space<vmem>>, vector<512x128xbf16>
    %cst_10 = arith.constant dense<0.000000e+00> : vector<8x128xf32>
    %11 = tpu.matmul %9, %10, %cst_10 {dimension_numbers = #tpu.dot_dimension_numbers<[1], [0], [0], [1], [0, 0, 1, 1], [], []>} : vector<8x512xbf16>, vector<512x128xbf16>, vector<8x128xf32> -> vector<8x128xf32>
    %cst_11 = arith.constant dense<0.000000e+00> : vector<8xf32>
    %12 = vector.multi_reduction <add>, %11, %cst_11 [1] : vector<8x128xf32> to vector<8xf32>
    %13 = vector.shape_cast %12 : vector<8xf32> to vector<8x1xf32>
    %14 = arith.mulf %11, %11 : vector<8x128xf32>
    %cst_12 = arith.constant dense<0.000000e+00> : vector<8xf32>
    %15 = vector.multi_reduction <add>, %14, %cst_12 [1] : vector<8x128xf32> to vector<8xf32>
    %16 = vector.shape_cast %15 : vector<8xf32> to vector<8x1xf32>
    %cst_13 = arith.constant 3.125000e-02 : f32
    %17 = vector.broadcast %cst_13 : f32 to vector<8x1xf32>
    %18 = arith.mulf %13, %17 : vector<8x1xf32>
    %cst_14 = arith.constant 3.125000e-02 : f32
    %19 = vector.broadcast %cst_14 : f32 to vector<8x1xf32>
    %20 = arith.mulf %16, %19 : vector<8x1xf32>
    %21 = arith.mulf %18, %18 : vector<8x1xf32>
    %22 = arith.subf %20, %21 : vector<8x1xf32>
    %cst_15 = arith.constant 0.000000e+00 : f32
    %23 = vector.broadcast %cst_15 : f32 to vector<8x1xf32>
    %24 = arith.maximumf %22, %23 : vector<8x1xf32>
    %25 = vector.broadcast %18 : vector<8x1xf32> to vector<8x128xf32>
    %26 = arith.subf %11, %25 : vector<8x128xf32>
    %cst_16 = arith.constant 9.99999974E-6 : f32
    %27 = vector.broadcast %cst_16 : f32 to vector<8x1xf32>
    %28 = arith.addf %24, %27 : vector<8x1xf32>
    %29 = math.rsqrt %28 : vector<8x1xf32>
    %30 = vector.broadcast %29 : vector<8x1xf32> to vector<8x128xf32>
    %31 = arith.mulf %26, %30 : vector<8x128xf32>
    %c0_17 = arith.constant 0 : index
    %c0_18 = arith.constant 0 : index
    %32 = vector.load %arg6[%c0_17, %c0_18] : memref<1x128xf32, #tpu.memory_space<vmem>>, vector<1x128xf32>
    %33 = vector.broadcast %32 : vector<1x128xf32> to vector<8x128xf32>
    %34 = arith.mulf %31, %33 : vector<8x128xf32>
    %c0_19 = arith.constant 0 : index
    %c0_20 = arith.constant 0 : index
    %35 = vector.load %arg7[%c0_19, %c0_20] : memref<1x128xf32, #tpu.memory_space<vmem>>, vector<1x128xf32>
    %36 = vector.broadcast %35 : vector<1x128xf32> to vector<8x128xf32>
    %37 = arith.addf %34, %36 : vector<8x128xf32>
    %cst_21 = arith.constant 0.000000e+00 : f32
    %38 = vector.broadcast %cst_21 : f32 to vector<8x128xf32>
    %39 = arith.maximumf %37, %38 : vector<8x128xf32>
    %c0_22 = arith.constant 0 : index
    %c0_23 = arith.constant 0 : index
    %40 = vector.load %arg8[%c0_22, %c0_23] : memref<8x128xf32, #tpu.memory_space<vmem>>, vector<8x128xf32>
    tpu.vector_store %arg8[%c0_22, %c0_23], %39 {strides = array<i32>} : memref<8x128xf32, #tpu.memory_space<vmem>>, vector<8x128xf32>,
    return
  }
  func.func @transform_0(%arg0: i32) -> (i32, i32) {
    %c0_i32 = arith.constant 0 : i32
    %c0_i32_0 = arith.constant 0 : i32
    return %arg0, %c0_i32 : i32, i32
  }
  func.func @transform_1(%arg0: i32) -> (i32, i32) {
    %c0_i32 = arith.constant 0 : i32
    %c0_i32_0 = arith.constant 0 : i32
    return %arg0, %c0_i32 : i32, i32
  }
  func.func @transform_2(%arg0: i32) -> (i32, i32) {
    %c0_i32 = arith.constant 0 : i32
    %c0_i32_0 = arith.constant 0 : i32
    %c0_i32_1 = arith.constant 0 : i32
    return %c0_i32, %c0_i32_0 : i32, i32
  }
  func.func @transform_3(%arg0: i32) -> (i32, i32) {
    %c0_i32 = arith.constant 0 : i32
    %c0_i32_0 = arith.constant 0 : i32
    %c0_i32_1 = arith.constant 0 : i32
    return %c0_i32, %c0_i32_0 : i32, i32
  }
  func.func @transform_4(%arg0: i32) -> (i32, i32) {
    %c0_i32 = arith.constant 0 : i32
    %c0_i32_0 = arith.constant 0 : i32
    %c0_i32_1 = arith.constant 0 : i32
    return %c0_i32, %c0_i32_0 : i32, i32
  }
  func.func @transform_5(%arg0: i32) -> (i32, i32) {
    %c0_i32 = arith.constant 0 : i32
    %c0_i32_0 = arith.constant 0 : i32
    %c0_i32_1 = arith.constant 0 : i32
    return %c0_i32, %c0_i32_0 : i32, i32
  }
  func.func @transform_6(%arg0: i32) -> (i32, i32) {
    %c0_i32 = arith.constant 0 : i32
    %c0_i32_0 = arith.constant 0 : i32
    %c0_i32_1 = arith.constant 0 : i32
    return %c0_i32, %c0_i32_0 : i32, i32
  }
  func.func @transform_7(%arg0: i32) -> (i32, i32) {
    %c0_i32 = arith.constant 0 : i32
    %c0_i32_0 = arith.constant 0 : i32
    return %arg0, %c0_i32 : i32, i32
  }
}

</mosaic_0001>

<bundles_post_ra>
// kernel: tpu_custom_call.1
= control target key start
LH: loop header
LB: loop body
LE: loop exit
PB: predicated region body
PF: predicated region fallthrough
CT: control target
= control target key end

     0   :  { %12 = vsyncpa [#allocation3], 0  ;;  %s1165_s0 = inlined_call_operand.hbm [shape: f32[8,32], index: 0, kind: input, shape index: {}]   ;;  %s1166_s1 = inlined_call_operand.hbm [shape: f32[8,16], index: 1, kind: input, shape index: {}]   ;;  %s1167_s2 = inlined_call_operand.hbm [shape: bf16[32,512], index: 2, kind: input, shape index: {}]   ;;  %s1168_s3 = inlined_call_operand.hbm [shape: bf16[16,512], index: 3, kind: input, shape index: {}]   ;;  %s1169_s4 = inlined_call_operand.hbm [shape: bf16[512,128], index: 4, kind: input, shape index: {}]   ;;  %s1170_s5 = inlined_call_operand.vmem [shape: f32[1,128], index: 5, kind: input, shape index: {}]   ;;  %s1171_s6 = inlined_call_operand.vmem [shape: f32[1,128], index: 6, kind: input, shape index: {}]   ;;  %s1172_s7 = inlined_call_operand.hbm [shape: f32[8,128], index: 7, kind: output, shape index: {}]  }
   0x1   :  { %13 = vsyncpa [#allocation6], 0 }
   0x2   :  { %14 = vsyncpa [#allocation9], 0 }
   0x3   :  { %15 = vsyncpa [#allocation4], 0  ;;  %s1030_s24 = smov [#allocation5]   ;;  %s890_s28 = scalar_lea.hbm %s1166_s1, 128 }
   0x4   :  { %s32_s25 = sshll.u32 %s1030_s24, 4  ;;  %p891_p0 = scmp.ne.s32.totalorder %s1166_s1, %s890_s28  ;;  %s33_s25 = int_to_ptr.vmem [resolvable:$true] %s32_s25 }
   0x5   :  { %p894_p1 = scmp.lt.u32.totalorder %s890_s28, %s1166_s1 }
   0x7   :  { %p896_p2 = pnand %p894_p1, %p891_p0 }
   0x9   :  { %899 = shalt.err (!%p896_p2)
}
   0xa   :  { %s900_s10 = scalar_lea.vmem %s33_s25, 128  ;;  %p905_p4 = scmp.lt.s32.totalorder %s33_s25, %s33_s25 }
   0xb   :  { %p901_p3 = scmp.ne.s32.totalorder %s33_s25, %s900_s10  ;;  %p906_p5 = scmp.lt.s32.totalorder %s900_s10, %s900_s10 }
   0xd   :  { %p907_p6 = por %p906_p5, %p905_p4 }
   0xf   :  { %p908_p7 = pnand %p907_p6, %p901_p3 }
  0x11   :  { %911 = shalt.err (!%p908_p7)
}
  0x12   :  { %35 = dma.hbm_to_vmem [thread:$0]  %s1166_s1, 128, %s33_s25, [#allocation6]  }
  0x13   :  { %s1031_s13 = smov [#allocation8]   ;;  %s1032_s15 = smov [#allocation2]  }
  0x14   :  { %s53_s14 = sshll.u32 %s1031_s13, 4  ;;  %s22_s16 = sshll.u32 %s1032_s15, 4  ;;  %s54_s14 = int_to_ptr.vmem [resolvable:$true] %s53_s14  ;;  %s23_s16 = int_to_ptr.vmem [resolvable:$true] %s22_s16 }
  0x15   :  { %s912_s19 = scalar_lea.hbm %s1168_s3, 512 }
  0x16   :  { %p913_p8 = scmp.ne.s32.totalorder %s1168_s3, %s912_s19  ;;  %p916_p9 = scmp.lt.u32.totalorder %s912_s19, %s1168_s3 }
  0x18   :  { %p918_p10 = pnand %p916_p9, %p913_p8 }
  0x1a   :  { %921 = shalt.err (!%p918_p10)
}
  0x1b   :  { %s922_s1 = scalar_lea.vmem %s54_s14, 512  ;;  %p927_p12 = scmp.lt.s32.totalorder %s54_s14, %s54_s14 }
  0x1c   :  { %p923_p11 = scmp.ne.s32.totalorder %s54_s14, %s922_s1  ;;  %p928_p13 = scmp.lt.s32.totalorder %s922_s1, %s922_s1 }
  0x1e   :  { %p929_p0 = por %p928_p13, %p927_p12 }
  0x20   :  { %p930_p1 = pnand %p929_p0, %p923_p11 }
  0x22   :  { %933 = shalt.err (!%p930_p1)
}
  0x23   :  { %s1033_s24 = smov 256   ;;  %s1034_s25 = smov 16  }
  0x24   :  { %59 = dma.hbm_to_vmem [thread:$0]  %s1168_s3, 512, %s54_s14, [#allocation9], %s1033_s24, %s1033_s24, %s1034_s25  }
  0x25   :  { %s934_s30 = scalar_lea.hbm %s1165_s0, 128 }
  0x26   :  { %p935_p2 = scmp.ne.s32.totalorder %s1165_s0, %s934_s30  ;;  %p938_p3 = scmp.lt.u32.totalorder %s934_s30, %s1165_s0 }
  0x28   :  { %p940_p4 = pnand %p938_p3, %p935_p2 }
  0x2a   :  { %943 = shalt.err (!%p940_p4)
}
  0x2b   :  { %s944_s12 = scalar_lea.vmem %s23_s16, 128  ;;  %p949_p6 = scmp.lt.s32.totalorder %s23_s16, %s23_s16 }
  0x2c   :  { %p945_p5 = scmp.ne.s32.totalorder %s23_s16, %s944_s12  ;;  %p950_p7 = scmp.lt.s32.totalorder %s944_s12, %s944_s12 }
  0x2e   :  { %p951_p8 = por %p950_p7, %p949_p6 }
  0x30   :  { %p952_p9 = pnand %p951_p8, %p945_p5 }
  0x32   :  { %955 = shalt.err (!%p952_p9)
}
  0x33   :  { %25 = dma.hbm_to_vmem [thread:$0]  %s1165_s0, 128, %s23_s16, [#allocation3]  }
  0x34   :  { %s1035_s14 = smov [#allocation7]   ;;  %s1036_s17 = smov [#allocation10]  }
  0x35   :  { %s41_s15 = sshll.u32 %s1035_s14, 4  ;;  %s65_s18 = sshll.u32 %s1036_s17, 4  ;;  %s42_s15 = int_to_ptr.vmem [resolvable:$true] %s41_s15  ;;  %s66_s18 = int_to_ptr.vmem [resolvable:$true] %s65_s18 }
  0x36   :  { %s956_s21 = scalar_lea.hbm %s1167_s2, 1024 }
  0x37   :  { %p957_p10 = scmp.ne.s32.totalorder %s1167_s2, %s956_s21  ;;  %p960_p11 = scmp.lt.u32.totalorder %s956_s21, %s1167_s2 }
  0x39   :  { %p962_p12 = pnand %p960_p11, %p957_p10 }
  0x3b   :  { %965 = shalt.err (!%p962_p12)
}
  0x3c   :  { %s966_s0 = scalar_lea.vmem %s42_s15, 1024  ;;  %p971_p0 = scmp.lt.s32.totalorder %s42_s15, %s42_s15 }
  0x3d   :  { %p967_p13 = scmp.ne.s32.totalorder %s42_s15, %s966_s0  ;;  %p972_p1 = scmp.lt.s32.totalorder %s966_s0, %s966_s0 }
  0x3f   :  { %p973_p2 = por %p972_p1, %p971_p0 }
  0x41   :  { %p974_p3 = pnand %p973_p2, %p967_p13 }
  0x43   :  { %977 = shalt.err (!%p974_p3)
}
  0x44   :  { %47 = dma.hbm_to_vmem [thread:$0]  %s1167_s2, 1024, %s42_s15, [#allocation6], %s1033_s24, %s1033_s24, %s1034_s25  }
  0x45   :  { %s978_s30 = scalar_lea.hbm %s1169_s4, 4096 }
  0x46   :  { %p979_p4 = scmp.ne.s32.totalorder %s1169_s4, %s978_s30  ;;  %p982_p5 = scmp.lt.u32.totalorder %s978_s30, %s1169_s4 }
  0x48   :  { %p984_p6 = pnand %p982_p5, %p979_p4 }
  0x4a   :  { %987 = shalt.err (!%p984_p6)
}
  0x4b   :  { %s988_s12 = scalar_lea.vmem %s66_s18, 4096  ;;  %p993_p8 = scmp.lt.s32.totalorder %s66_s18, %s66_s18 }
  0x4c   :  { %p989_p7 = scmp.ne.s32.totalorder %s66_s18, %s988_s12  ;;  %p994_p9 = scmp.lt.s32.totalorder %s988_s12, %s988_s12 }
  0x4e   :  { %p995_p10 = por %p994_p9, %p993_p8 }
  0x50   :  { %p996_p11 = pnand %p995_p10, %p989_p7 }
  0x52   :  { %999 = shalt.err (!%p996_p11)
}
  0x53   :  { %s1037_s2 = smov 64   ;;  %s1038_s24 = smov 4  }
  0x54   :  { %71 = dma.hbm_to_vmem [thread:$0]  %s1169_s4, 4096, %s66_s18, [#allocation9], %s1037_s2, %s1037_s2, %s1038_s24  }
  0x55   :  { %1022 = dma.done.wait [#allocation3], 128  }
  0x56   :  { %1023 = vsyncadd [#allocation3], 4294967168 }
  0x57   :  { %1024 = dma.done.wait [#allocation6], 1152  }
  0x58   :  { %1025 = vsyncadd [#allocation6], 4294966144 }
  0x59   :  { %1026 = dma.done.wait [#allocation9], 4608  }
  0x5a   :  { %1027 = vsyncadd [#allocation9], 4294962688  ;;  %v1039_v0 = vmov 0   ;;  %v838_v1 = vld [vmem:[#allocation7 + $0x4] ss:$16 sps:$4 sm:$0xff]   ;;  %vm144_vm0 = vcmask 261120  }
  0x5b   :  { %180 = vmatprep.mubr.bf16.mxu0 %v1039_v0  ;;  %221 = vmatprep.mubr.bf16.mxu1 %v1039_v0  ;;  %v840_v2 = vld [vmem:[#allocation7 + $0xc] ss:$16 sps:$4 sm:$0xff]   ;;  %v842_v3 = vld [vmem:[#allocation7] ss:$16 sps:$4 sm:$0xff]   ;;  %v843_v4 = vld [vmem:[#allocation7 + $0x8] ss:$16 sps:$4 sm:$0xff]  }
  0x5c   :  { %148 = vmatprep.subr.bf16.mxu0 %v838_v1  ;;  %189 = vmatprep.subr.bf16.mxu1 %v840_v2  ;;  %v844_v5 = vld [vmem:[#allocation7 + $0x24] ss:$16 sps:$4 sm:$0xff]   ;;  %v846_v6 = vld [vmem:[#allocation7 + $0x2c] ss:$16 sps:$4 sm:$0xff]   ;;  %v848_v7 = vld [vmem:[#allocation7 + $0x20] ss:$16 sps:$4 sm:$0xff]  }
  0x5d   :  { %149 = vmatpush1.bf16.msra.mxu0 %v842_v3  ;;  %190 = vmatpush1.bf16.msra.mxu1 %v843_v4  ;;  %v849_v8 = vld [vmem:[#allocation7 + $0x28] ss:$16 sps:$4 sm:$0xff]   ;;  %v92_v9 = vld [vmem:[#allocation2] sm:$0xff]  ;;  %v855_v14 = vld [vmem:[#allocation8 + $0xc] ss:$16 sps:$4 sm:$0xff]   ;;  %vm254_vm1 = vcmask 130048  }
  0x5e   :  { %150 = vmatprep.subr.bf16.mxu0 %v844_v5  ;;  %191 = vmatprep.subr.bf16.mxu1 %v846_v6  ;;  %v852_v10 = vld [vmem:[#allocation8 + $0x4] ss:$16 sps:$4 sm:$0xff]   ;;  %v93_v11 = vpack.c.bf16 %v92_v9, %v92_v9  ;;  %v850_v12 = vld [vmem:[#allocation8] ss:$16 sps:$4 sm:$0xff]   ;;  %v853_v13 = vld [vmem:[#allocation8 + $0x8] ss:$16 sps:$4 sm:$0xff]  }
  0x5f   :  { %v856_v15 = vld [vmem:[#allocation10 + $0x40] sm:$0xff]   ;;  %v94_v17 = vld [vmem:[#allocation5] sm:$0xff]  ;;  %v860_v21 = vld [vmem:[#allocation10 + $0x48] sm:$0xff]   ;;  %s1040_s17 = smov [#allocation11]  }
  0x60   :  { %v857_v16 = vld [vmem:[#allocation10 + $0xc0] sm:$0xff]   ;;  %v95_v19 = vpack.c.bf16 %v94_v17, %v94_v17  ;;  %v861_v22 = vld [vmem:[#allocation10 + $0xc8] sm:$0xff]   ;;  %v864_v25 = vld [vmem:[#allocation10 + $0x50] sm:$0xff]   ;;  %s722_s18 = sshll.u32 %s1040_s17, 4  ;;  %s723_s18 = int_to_ptr.vmem [resolvable:$true] %s722_s18 }
  0x61   :  { %151 = vmatpush1.bf16.msra.mxu0 %v848_v7  ;;  %192 = vmatpush1.bf16.msra.mxu1 %v849_v8  ;;  %v858_v18 = vld [vmem:[#allocation10] sm:$0xff]   ;;  %v862_v23 = vld [vmem:[#allocation10 + $0x8] sm:$0xff]   ;;  %v865_v26 = vld [vmem:[#allocation10 + $0xd0] sm:$0xff]   ;;  %s1000_s19 = scalar_lea.vmem %s723_s18, 128  ;;  %p1005_p13 = scmp.lt.s32.totalorder %s723_s18, %s723_s18 }
  0x62   :  { %258 = vmatprep.subr.bf16.mxu0 %v852_v10  ;;  %299 = vmatprep.subr.bf16.mxu1 %v855_v14  ;;  %v859_v20 = vld [vmem:[#allocation10 + $0x80] sm:$0xff]   ;;  %v863_v24 = vld [vmem:[#allocation10 + $0x88] sm:$0xff]   ;;  %v866_v27 = vld [vmem:[#allocation10 + $0x10] sm:$0xff]   ;;  %p1001_p12 = scmp.ne.s32.totalorder %s723_s18, %s1000_s19  ;;  %p1006_p0 = scmp.lt.s32.totalorder %s1000_s19, %s1000_s19 }
  0x63   :  { %v867_v28 = vld [vmem:[#allocation10 + $0x90] sm:$0xff]   ;;  %v868_v29 = vld [vmem:[#allocation10 + $0x58] sm:$0xff]   ;;  %v872_v33 = vld [vmem:[#allocation10 + $0x60] sm:$0xff]  }
  0x64   :  { %741 = vmatmul.mubr.msk.bf16.vlgmr.msra.gmra.mrb[0].mxu0 %vm144_vm0, %v93_v11  ;;  %742 = vmatmul.mubr.msk.bf16.vlgmr.msra.gmra.mrb[0].mxu1 %vm144_vm0, %v93_v11  ;;  %v869_v30 = vld [vmem:[#allocation10 + $0xd8] sm:$0xff]   ;;  %v873_v34 = vld [vmem:[#allocation10 + $0xe0] sm:$0xff]   ;;  %v876_v37 = vld [vmem:[#allocation10 + $0x68] sm:$0xff]   ;;  %p1007_p1 = por %p1006_p0, %p1005_p13 }
  0x65   :  { %259 = vmatpush1.bf16.msra.mxu0 %v850_v12  ;;  %300 = vmatpush1.bf16.msra.mxu1 %v853_v13  ;;  %v870_v31 = vld [vmem:[#allocation10 + $0x18] sm:$0xff]   ;;  %v874_v35 = vld [vmem:[#allocation10 + $0x20] sm:$0xff]   ;;  %v877_v38 = vld [vmem:[#allocation10 + $0xe8] sm:$0xff]  }
  0x66   :  { %290 = vmatprep.mubr.bf16.mxu0 %v1039_v0  ;;  %331 = vmatprep.mubr.bf16.mxu1 %v1039_v0  ;;  %v871_v32 = vld [vmem:[#allocation10 + $0x98] sm:$0xff]   ;;  %v875_v36 = vld [vmem:[#allocation10 + $0xa0] sm:$0xff]   ;;  %v878_v39 = vld [vmem:[#allocation10 + $0x28] sm:$0xff]   ;;  %p1008_p2 = pnand %p1007_p1, %p1001_p12 }
  0x67   :  { %783 = vmatprep.subr.bf16.mxu0 %v856_v15  ;;  %805 = vmatprep.subr.bf16.mxu1 %v857_v16  ;;  %v879_v40 = vld [vmem:[#allocation10 + $0xa8] sm:$0xff]   ;;  %v880_v41 = vld [vmem:[#allocation10 + $0x70] sm:$0xff]   ;;  %v884_v45 = vld [vmem:[#allocation10 + $0x78] sm:$0xff]  }
  0x68   :  { %v881_v42 = vld [vmem:[#allocation10 + $0xf0] sm:$0xff]   ;;  %v885_v46 = vld [vmem:[#allocation10 + $0xf8] sm:$0xff]  }
  0x69   :  { %v882_v43 = vld [vmem:[#allocation10 + $0x30] sm:$0xff]   ;;  %v886_v47 = vld [vmem:[#allocation10 + $0x38] sm:$0xff]  }
  0x6a   :  { %v883_v44 = vld [vmem:[#allocation10 + $0xb0] sm:$0xff]   ;;  %v887_v48 = vld [vmem:[#allocation10 + $0xb8] sm:$0xff]  }
  0x6c   :  { %747 = vmatmul.mubr.msk.bf16.vlgmr.msra.gmra.mrb[4].mxu0 %vm254_vm1, %v95_v19  ;;  %748 = vmatmul.mubr.msk.bf16.vlgmr.msra.gmra.mrb[4].mxu1 %vm254_vm1, %v95_v19 }
  0x6d   :  { %784 = vmatpush3.bf16.msra.mxu0 %v858_v18  ;;  %806 = vmatpush3.bf16.msra.mxu1 %v859_v20 }
  0x6e   :  { %785 = vmatprep.subr.bf16.mxu0 %v860_v21  ;;  %807 = vmatprep.subr.bf16.mxu1 %v861_v22 }
  0x71   :  { %786 = vmatpush3.bf16.msra.mxu0 %v862_v23  ;;  %808 = vmatpush3.bf16.msra.mxu1 %v863_v24 }
  0x72   :  { %787 = vmatprep.subr.bf16.mxu0 %v864_v25  ;;  %809 = vmatprep.subr.bf16.mxu1 %v865_v26 }
  0x75   :  { %788 = vmatpush3.bf16.msra.mxu0 %v866_v27  ;;  %810 = vmatpush3.bf16.msra.mxu1 %v867_v28 }
  0x76   :  { %789 = vmatprep.subr.bf16.mxu0 %v868_v29  ;;  %811 = vmatprep.subr.bf16.mxu1 %v869_v30 }
  0x79   :  { %790 = vmatpush3.bf16.msra.mxu0 %v870_v31  ;;  %812 = vmatpush3.bf16.msra.mxu1 %v871_v32  ;;  %v781_v31 = vld [vmem:[%s1170_s5] ss:$0 sm:$0xff] }
  0x7a   :  { %791 = vmatprep.subr.bf16.mxu0 %v872_v33  ;;  %813 = vmatprep.subr.bf16.mxu1 %v873_v34  ;;  %v782_v33 = vld [vmem:[%s1171_s6] ss:$0 sm:$0xff] }
  0x7d   :  { %792 = vmatpush3.bf16.msra.mxu0 %v874_v35  ;;  %814 = vmatpush3.bf16.msra.mxu1 %v875_v36 }
  0x7e   :  { %793 = vmatprep.subr.bf16.mxu0 %v876_v37  ;;  %815 = vmatprep.subr.bf16.mxu1 %v877_v38 }
  0x81   :  { %794 = vmatpush3.bf16.msra.mxu0 %v878_v39  ;;  %816 = vmatpush3.bf16.msra.mxu1 %v879_v40 }
  0x82   :  { %795 = vmatprep.subr.bf16.mxu0 %v880_v41  ;;  %817 = vmatprep.subr.bf16.mxu1 %v881_v42 }
  0x85   :  { %796 = vmatpush3.bf16.msra.mxu0 %v882_v43  ;;  %818 = vmatpush3.bf16.msra.mxu1 %v883_v44 }
  0x86   :  { %797 = vmatprep.subr.bf16.mxu0 %v884_v45  ;;  %819 = vmatprep.subr.bf16.mxu1 %v885_v46 }
  0x89   :  { %798 = vmatpush3.bf16.msra.mxu0 %v886_v47  ;;  %820 = vmatpush3.bf16.msra.mxu1 %v887_v48 }
 0x137   :  { %v182_v49 = vpop.f32.mrb[0].mxu0  ;;  %v223_v50 = vpop.f32.mrb[0].mxu1 }
 0x138   :  { %v184_v51 = vpop.f32.mrb[1].mxu0  ;;  %v225_v52 = vpop.f32.mrb[1].mxu1 }
 0x139   :  { %v186_v53 = vpop.f32.mrb[2].mxu0  ;;  %v227_v54 = vpop.f32.mrb[2].mxu1 }
 0x13a   :  { %v187_v55 = vpop.f32.mrb[3].mxu0  ;;  %v228_v56 = vpop.f32.mrb[3].mxu1 }
 0x13f   :  { %v292_v57 = vpop.f32.mrb[4].mxu0  ;;  %v333_v58 = vpop.f32.mrb[4].mxu1 }
 0x140   :  { %v340_v59 = vmul.f32 %v292_v57, %v182_v49  ;;  %v342_v60 = vmul.f32 %v333_v58, %v223_v50  ;;  %v294_v61 = vpop.f32.mrb[5].mxu0  ;;  %v335_v62 = vpop.f32.mrb[5].mxu1 }
 0x141   :  { %v341_v63 = vmul.f32 %v294_v61, %v184_v51  ;;  %v343_v0 = vmul.f32 %v335_v62, %v225_v52  ;;  %v296_v1 = vpop.f32.mrb[6].mxu0  ;;  %v337_v2 = vpop.f32.mrb[6].mxu1 }
 0x142   :  { %v297_v3 = vpop.f32.mrb[7].mxu0  ;;  %v338_v4 = vpop.f32.mrb[7].mxu1  ;;  %v344_v7 = vpack.c.bf16 %v340_v59, %v340_v59  ;;  %v346_v8 = vpack.c.bf16 %v342_v60, %v342_v60 }
 0x143   :  { %v345_v5 = vpack.c.bf16 %v341_v63, %v341_v63  ;;  %v347_v6 = vpack.c.bf16 %v343_v0, %v343_v0 }
 0x145   :  { %636 = vmatprep.mubr.bf16.mxu0 %v345_v5  ;;  %676 = vmatprep.mubr.bf16.mxu1 %v347_v6 }
 0x146   :  { %637 = vmatmul.mubr.bf16.vlgmr.msra.gmra.mrb[8].mxu0 %v344_v7  ;;  %677 = vmatmul.mubr.bf16.vlgmr.msra.gmra.mrb[8].mxu1 %v346_v8 }
 0x219   :  { %v799_v9 = vpop.f32.mrb[8].mxu0  ;;  %v821_v10 = vpop.f32.mrb[8].mxu1 }
 0x21a   :  { %v800_v11 = vpop.f32.mrb[9].mxu0  ;;  %v822_v12 = vpop.f32.mrb[9].mxu1 }
 0x21b   :  { %v801_v13 = vadd.f32 %v800_v11, %v799_v9  ;;  %v823_v14 = vadd.f32 %v822_v12, %v821_v10  ;;  %v802_v15 = vpop.f32.mrb[10].mxu0  ;;  %v824_v16 = vpop.f32.mrb[10].mxu1 }
 0x21c   :  { %v803_v17 = vpop.f32.mrb[11].mxu0  ;;  %v825_v18 = vpop.f32.mrb[11].mxu1 }
 0x21d   :  { %v679_v19 = vadd.f32 %v823_v14, %v801_v13 }
 0x21f   :  { %684 = vadd.xlane.f32.xlu0 %v679_v19  ;;  %v686_v20 = vmul.f32 %v679_v19, %v679_v19 }
 0x223   :  { %687 = vadd.xlane.f32.xlu0 %v686_v20 }
 0x2ac   :  { %v685_v21 = vpop.xlane.xlu0 %684 }
 0x2ad   :  { %v689_v22 = vmul.f32 0.03125, %v685_v21 }
 0x2af   :  { %v691_v24 = vmul.f32 %v689_v22, %v689_v22  ;;  %v694_v29 = vsub.f32 %v679_v19, %v689_v22 }
 0x2b0   :  { %v688_v23 = vpop.xlane.xlu0 %687 }
 0x2b1   :  { %v690_v25 = vmul.f32 0.03125, %v688_v23 }
 0x2b3   :  { %v692_v26 = vsub.f32 %v690_v25, %v691_v24 }
 0x2b5   :  { %v693_v27 = vmax.f32 %v692_v26, 0.0 }
 0x2b7   :  { %v695_v28 = vadd.f32 1e-05, %v693_v27 }
 0x2b9   :  { %888 = vrsqrt.f32 %v695_v28 }
 0x2c3   :  { %v889_v30 = vpop.eup %888 }
 0x2c4   :  { %v697_v32 = vmul.f32 %v889_v30, %v694_v29 }
 0x2c6   :  { %v705_v34 = vmul.f32 %v781_v31, %v697_v32 }
 0x2c8   :  { %v713_v35 = vadd.f32 %v782_v33, %v705_v34 }
 0x2ca   :  { %v714_v36 = vmax.f32 %v713_v35, 0.0 }
 0x2cc   :  { %715 = vst [vmem:[#allocation11] sm:$0xff] %v714_v36 }
 0x2cd   :  { %1011 = shalt.err (!%p1008_p2)
}
 0x2ce   :  { %s1012_s21 = scalar_lea.hbm %s1172_s7, 128 }
 0x2cf   :  { %p1013_p3 = scmp.ne.s32.totalorder %s1172_s7, %s1012_s21  ;;  %p1016_p4 = scmp.lt.u32.totalorder %s1012_s21, %s1172_s7 }
 0x2d1   :  { %p1018_p5 = pnand %p1016_p4, %p1013_p3 }
 0x2d3   :  { %1021 = shalt.err (!%p1018_p5)
}
 0x2d4   :  { %725 = dma.vmem_to_hbm [thread:$0]  %s723_s18, 128, %s1172_s7, [#allocation4]  }
 0x2d5   :  { %1028 = dma.done.wait [#allocation4], 128  }
 0x2d6   :  { %1029 = vsyncadd [#allocation4], 4294967168 }
 0x2d7   :  { %729 = vsyncpa [#allocation3], 1 }
 0x2d8   :  { %730 = vsyncpa [#allocation6], 1 }
 0x2d9   :  { %731 = vsyncpa [#allocation9], 1 }
 0x2da   :  { %732 = vsyncpa [#allocation4], 1 }

</bundles_post_ra>
